<compile_context>
chip_gen: v5e
topology: v5e:2x2
jax: 0.10.0
libtpu: 0.0.40
codegen_flags: <defaults>
</compile_context>

<pallas_src>
import functools

import jax
import jax.numpy as jnp
from jax import lax
from jax.experimental import pallas as pl
from jax.experimental.pallas import tpu as pltpu

LANES = 128
SUBLANES = 8
MAX_TILE_ROWS = 2048  # 1 MiB f32 / input block; 6 MiB double-buffered total.


def _nll_kernel(out_ref, sig_ref, lab_ref, partial_ref, *, tile_rows, n_valid):
    o = out_ref[...]
    s = sig_ref[...]
    y = lab_ref[...]
    if o.dtype != jnp.float32:  # trace-time branch; no-op for f32 inputs
        o = o.astype(jnp.float32)
        s = s.astype(jnp.float32)
        y = y.astype(jnp.float32)

    d = o - y
    # 0.5 * exp(-sigma) * (output - labels)^2 + 0.5 * sigma + 1
    # exp -> EUP slot, mul/add -> VPU; both hidden under the HBM DMA.
    val = 0.5 * jnp.exp(-s) * d * d + 0.5 * s + 1.0

    if n_valid is not None:
        # Mask padded tail elements (otherwise each contributes +1.0).
        row = lax.broadcasted_iota(jnp.int32, (tile_rows, LANES), 0)
        lane = lax.broadcasted_iota(jnp.int32, (tile_rows, LANES), 1)
        flat = (pl.program_id(0) * tile_rows + row) * LANES + lane
        val = jnp.where(flat < n_valid, val, 0.0)

    # Per-tile partial sums: elementwise vreg adds only (no XLU, no SMEM RMW).
    partial_ref[...] = val.reshape(-1, SUBLANES, LANES).sum(axis=0)


def loss_compute_nll(output, output_sigma, labels):
    """Pallas implementation of LossCompute_NLL.forward.

    output, output_sigma, labels: arrays of identical shape (N, C, H, W).
    Returns a float32 scalar.
    """
    assert output.shape == output_sigma.shape == labels.shape
    assert output.ndim >= 3, "module divides by shape[0]*shape[1]*shape[2]"

    n_elems = output.size
    rows = -(-n_elems // LANES)
    rows8 = -(-rows // SUBLANES) * SUBLANES
    tile_rows = min(MAX_TILE_ROWS, rows8)
    padded_rows = -(-rows // tile_rows) * tile_rows
    padded_elems = padded_rows * LANES
    num_tiles = padded_rows // tile_rows

    def flat_pad(x):
        x = x.reshape(-1)
        if padded_elems != n_elems:
            x = jnp.pad(x, (0, padded_elems - n_elems))
        return x.reshape(padded_rows, LANES)

    o2 = flat_pad(output)
    s2 = flat_pad(output_sigma)
    y2 = flat_pad(labels)

    n_valid = None if padded_elems == n_elems else n_elems
    kernel = functools.partial(_nll_kernel, tile_rows=tile_rows, n_valid=n_valid)

    in_spec = pl.BlockSpec((tile_rows, LANES), lambda i: (i, 0))
    out_spec = pl.BlockSpec((SUBLANES, LANES), lambda i: (i, 0))

    partials = pl.pallas_call(
        kernel,
        out_shape=jax.ShapeDtypeStruct((num_tiles * SUBLANES, LANES), jnp.float32),
        grid_spec=pltpu.PrefetchScalarGridSpec(
            num_scalar_prefetch=0,
            grid=(num_tiles,),
            in_specs=[in_spec, in_spec, in_spec],
            out_specs=out_spec,
        ),
        compiler_params=pltpu.CompilerParams(
            dimension_semantics=("parallel",),  # independent tiles -> megacore OK
        ),
    )(o2, s2, y2)

    loss = jnp.sum(partials)
    denom = output.shape[0] * output.shape[1] * output.shape[2]
    return (loss / jnp.float32(denom)).astype(jnp.float32)


def _reference(output, output_sigma, labels):
    val = (0.5 * jnp.exp(-output_sigma) * (output - labels) ** 2
           + 0.5 * output_sigma + 1.0)
    loss = jnp.sum(val)
    return loss / output.shape[0] / output.shape[1] / output.shape[2]


if __name__ == "__main__":
    key = jax.random.PRNGKey(0)

    # (shape, tolerance): primary small NCHW case, a ragged-tail case (not a
    # multiple of 1024 elements -> exercises the in-kernel mask), and a
    # multi-tile case exercising >1 grid step.
    cases = [
        ((2, 4, 16, 16), 1e-5),
        ((2, 3, 7, 5), 1e-5),
        ((8, 16, 64, 64), 1e-4),
    ]

    for shape, tol in cases:
        key, k1, k2, k3 = jax.random.split(key, 4)
        output = jax.random.normal(k1, shape, dtype=jnp.float32)
        output_sigma = jax.random.normal(k2, shape, dtype=jnp.float32) * 0.5
        labels = jax.random.normal(k3, shape, dtype=jnp.float32)

        loss = jax.block_until_ready(
            loss_compute_nll(output, output_sigma, labels))
        ref = jax.block_until_ready(_reference(output, output_sigma, labels))
        assert jnp.allclose(loss, ref, rtol=tol, atol=tol), (shape, loss, ref)

    print("KERNEL_OK")
</pallas_src>

<mosaic_0001>
module attributes {stable_mosaic.version = 11 : i64} {
  func.func @_nll_kernel(%arg0: i32, %arg1: memref<16x128xf32, #tpu.memory_space<vmem>>, %arg2: memref<16x128xf32, #tpu.memory_space<vmem>>, %arg3: memref<16x128xf32, #tpu.memory_space<vmem>>, %arg4: memref<8x128xf32, #tpu.memory_space<vmem>>) attributes {dimension_semantics = [#tpu.dimension_semantics<parallel>], iteration_bounds = array<i64: 1>, scalar_prefetch = 0 : i64, scratch_operands = 0 : i64, tpu.core_type = #tpu.core_type<tc>, window_params = [{transform_indices = @transform_0, window_bounds = array<i64: 16, 128>}, {transform_indices = @transform_1, window_bounds = array<i64: 16, 128>}, {transform_indices = @transform_2, window_bounds = array<i64: 16, 128>}, {transform_indices = @transform_3, window_bounds = array<i64: 8, 128>}]} {
    %c0 = arith.constant 0 : index
    %c0_0 = arith.constant 0 : index
    %0 = vector.load %arg1[%c0, %c0_0] : memref<16x128xf32, #tpu.memory_space<vmem>>, vector<16x128xf32>
    %c0_1 = arith.constant 0 : index
    %c0_2 = arith.constant 0 : index
    %1 = vector.load %arg2[%c0_1, %c0_2] : memref<16x128xf32, #tpu.memory_space<vmem>>, vector<16x128xf32>
    %c0_3 = arith.constant 0 : index
    %c0_4 = arith.constant 0 : index
    %2 = vector.load %arg3[%c0_3, %c0_4] : memref<16x128xf32, #tpu.memory_space<vmem>>, vector<16x128xf32>
    %3 = arith.subf %0, %2 : vector<16x128xf32>
    %cst = arith.constant 0.000000e+00 : f32
    %4 = vector.broadcast %cst : f32 to vector<16x128xf32>
    %5 = arith.subf %4, %1 : vector<16x128xf32>
    %6 = math.exp %5 : vector<16x128xf32>
    %cst_5 = arith.constant 5.000000e-01 : f32
    %7 = vector.broadcast %cst_5 : f32 to vector<16x128xf32>
    %8 = arith.mulf %7, %6 : vector<16x128xf32>
    %9 = arith.mulf %8, %3 : vector<16x128xf32>
    %10 = arith.mulf %9, %3 : vector<16x128xf32>
    %cst_6 = arith.constant 5.000000e-01 : f32
    %11 = vector.broadcast %cst_6 : f32 to vector<16x128xf32>
    %12 = arith.mulf %11, %1 : vector<16x128xf32>
    %13 = arith.addf %10, %12 : vector<16x128xf32>
    %cst_7 = arith.constant 1.000000e+00 : f32
    %14 = vector.broadcast %cst_7 : f32 to vector<16x128xf32>
    %15 = arith.addf %13, %14 : vector<16x128xf32>
    %16 = vector.shape_cast %15 : vector<16x128xf32> to vector<2x8x128xf32>
    %cst_8 = arith.constant dense<0.000000e+00> : vector<8x128xf32>
    %17 = vector.multi_reduction <add>, %16, %cst_8 [0] : vector<2x8x128xf32> to vector<8x128xf32>
    %c0_9 = arith.constant 0 : index
    %c0_10 = arith.constant 0 : index
    %18 = vector.load %arg4[%c0_9, %c0_10] : memref<8x128xf32, #tpu.memory_space<vmem>>, vector<8x128xf32>
    tpu.vector_store %arg4[%c0_9, %c0_10], %17 {strides = array<i32>} : memref<8x128xf32, #tpu.memory_space<vmem>>, vector<8x128xf32>,
    return
  }
  func.func @transform_0(%arg0: i32) -> (i32, i32) {
    %c0_i32 = arith.constant 0 : i32
    %c0_i32_0 = arith.constant 0 : i32
    return %arg0, %c0_i32 : i32, i32
  }
  func.func @transform_1(%arg0: i32) -> (i32, i32) {
    %c0_i32 = arith.constant 0 : i32
    %c0_i32_0 = arith.constant 0 : i32
    return %arg0, %c0_i32 : i32, i32
  }
  func.func @transform_2(%arg0: i32) -> (i32, i32) {
    %c0_i32 = arith.constant 0 : i32
    %c0_i32_0 = arith.constant 0 : i32
    return %arg0, %c0_i32 : i32, i32
  }
  func.func @transform_3(%arg0: i32) -> (i32, i32) {
    %c0_i32 = arith.constant 0 : i32
    %c0_i32_0 = arith.constant 0 : i32
    return %arg0, %c0_i32 : i32, i32
  }
}

</mosaic_0001>

<bundles_post_ra>
// kernel: tpu_custom_call.1
= control target key start
LH: loop header
LB: loop body
LE: loop exit
PB: predicated region body
PF: predicated region fallthrough
CT: control target
= control target key end

     0   :  { %8 = vsyncpa [#allocation3], 0  ;;  %s258_s0 = inlined_call_operand.hbm [shape: f32[16,128], index: 0, kind: input, shape index: {}]   ;;  %s259_s1 = inlined_call_operand.hbm [shape: f32[16,128], index: 1, kind: input, shape index: {}]   ;;  %s260_s2 = inlined_call_operand.hbm [shape: f32[16,128], index: 2, kind: input, shape index: {}]   ;;  %s261_s3 = inlined_call_operand.hbm [shape: f32[8,128], index: 3, kind: output, shape index: {}]  }
   0x1   :  { %9 = vsyncpa [#allocation6], 0 }
   0x2   :  { %10 = vsyncpa [#allocation4], 0  ;;  %s28_s14 = sshll.u32 %s259_s1, 4  ;;  %s220_s15 = smov [#allocation5]   ;;  %s29_s14 = int_to_ptr.hbm [resolvable:$true] %s28_s14 }
   0x3   :  { %s30_s16 = sshll.u32 %s220_s15, 4  ;;  %s15_s19 = sshll.u32 %s258_s0, 4  ;;  %s31_s16 = int_to_ptr.vmem [resolvable:$true] %s30_s16  ;;  %s16_s19 = int_to_ptr.hbm [resolvable:$true] %s15_s19 }
   0x4   :  { %s221_s20 = smov 128   ;;  %s222_s21 = smov 8  }
   0x5   :  { %36 = dma.hbm_to_vmem [thread:$0]  %s29_s14, 256, %s31_s16, [#allocation6], %s221_s20, %s221_s20, %s222_s21  }
   0x6   :  { %s223_s22 = smov [#allocation2]   ;;  %s41_s26 = sshll.u32 %s260_s2, 4  ;;  %s42_s26 = int_to_ptr.hbm [resolvable:$true] %s41_s26 }
   0x7   :  { %s17_s23 = sshll.u32 %s223_s22, 4  ;;  %s224_s1 = smov [#allocation7]   ;;  %s18_s23 = int_to_ptr.vmem [resolvable:$true] %s17_s23 }
   0x8   :  { %23 = dma.hbm_to_vmem [thread:$0]  %s16_s19, 256, %s18_s23, [#allocation3], %s221_s20, %s221_s20, %s222_s21  }
   0x9   :  { %s43_s27 = sshll.u32 %s224_s1, 4  ;;  %s44_s27 = int_to_ptr.vmem [resolvable:$true] %s43_s27 }
   0xa   :  { %49 = dma.hbm_to_vmem [thread:$0]  %s42_s26, 256, %s44_s27, [#allocation6], %s221_s20, %s221_s20, %s222_s21  }
   0xb   :  { %214 = dma.done.wait [#allocation3], 256  }
   0xc   :  { %215 = vsyncadd [#allocation3], 4294967040 }
   0xd   :  { %216 = dma.done.wait [#allocation6], 512  }
   0xe   :  { %217 = vsyncadd [#allocation6], 4294966784  ;;  %v64_v0 = vld [vmem:[#allocation5] sm:$0xff]  ;;  %v65_v1 = vld [vmem:[#allocation5 + $0x8] sm:$0xff]  ;;  %s225_s0 = smov [#allocation8]   ;;  %s97_s30 = sshll.u32 %s261_s3, 4  ;;  %s98_s30 = int_to_ptr.hbm [resolvable:$true] %s97_s30 }
   0xf   :  { %v70_v2 = vsub.f32 0.0, %v64_v0  ;;  %v71_v3 = vsub.f32 0.0, %v65_v1  ;;  %v62_v6 = vld [vmem:[#allocation2] sm:$0xff]  ;;  %v63_v8 = vld [vmem:[#allocation2 + $0x8] sm:$0xff]  ;;  %v82_v17 = vmul.f32 0.5, %v64_v0  ;;  %v83_v19 = vmul.f32 0.5, %v65_v1 }
  0x10   :  { %v66_v7 = vld [vmem:[#allocation7] sm:$0xff]  ;;  %v67_v9 = vld [vmem:[#allocation7 + $0x8] sm:$0xff]  ;;  %s95_s2 = sshll.u32 %s225_s0, 4  ;;  %s96_s2 = int_to_ptr.vmem [resolvable:$true] %s95_s2 }
  0x11   :  { %v72_v4 = vmul.f32 1.442695, %v70_v2  ;;  %v74_v5 = vmul.f32 1.442695, %v71_v3  ;;  %v68_v10 = vsub.f32 %v62_v6, %v66_v7  ;;  %v69_v12 = vsub.f32 %v63_v8, %v67_v9 }
  0x13   :  { %114 = vpow2.f32 %v72_v4 }
  0x14   :  { %116 = vpow2.f32 %v74_v5 }
  0x19   :  { %v115_v11 = vpop.eup %114 }
  0x1a   :  { %v117_v13 = vpop.eup %116  ;;  %v76_v14 = vmul.f32 0.5, %v115_v11 }
  0x1b   :  { %v77_v15 = vmul.f32 0.5, %v117_v13 }
  0x1c   :  { %v78_v16 = vmul.f32 %v76_v14, %v68_v10 }
  0x1d   :  { %v79_v18 = vmul.f32 %v77_v15, %v69_v12 }
  0x1e   :  { %v80_v20 = vmul.f32 %v78_v16, %v68_v10 }
  0x1f   :  { %v81_v21 = vmul.f32 %v79_v18, %v69_v12 }
  0x20   :  { %v84_v22 = vadd.f32 %v82_v17, %v80_v20 }
  0x21   :  { %v85_v23 = vadd.f32 %v83_v19, %v81_v21 }
  0x22   :  { %v86_v24 = vadd.f32 1.0, %v84_v22 }
  0x23   :  { %v87_v25 = vadd.f32 1.0, %v85_v23 }
  0x25   :  { %v88_v26 = vadd.f32 %v87_v25, %v86_v24 }
  0x27   :  { %89 = vst [vmem:[#allocation8] sm:$0xff] %v88_v26 }
  0x28   :  { %100 = dma.vmem_to_hbm [thread:$0]  %s96_s2, 128, %s98_s30, [#allocation4]  }
  0x29   :  { %218 = dma.done.wait [#allocation4], 128  }
  0x2a   :  { %219 = vsyncadd [#allocation4], 4294967168 }
  0x2b   :  { %105 = vsyncpa [#allocation3], 1 }
  0x2c   :  { %106 = vsyncpa [#allocation6], 1 }
  0x2d   :  { %107 = vsyncpa [#allocation4], 1 }

</bundles_post_ra>
